<compile_context>
chip_gen: v5e
topology: v5e:2x2
jax: 0.10.0
libtpu: 0.0.40
codegen_flags: <defaults>
</compile_context>

<pallas_src>
import jax
import jax.numpy as jnp
from jax import lax
from jax.experimental import pallas as pl
from jax.experimental.pallas import tpu as pltpu


def _mc_ce_kernel(x_ref, t_ref, nll_ref):
    """Per-row softmax cross-entropy NLL for one (TR, C) row tile.

    x_ref  : (TR, C) logits tile (input dtype; upcast fused per use)
    t_ref  : (TR, 1) int32 target labels for these rows
    nll_ref: (TR, 1) float32 per-row negative log-likelihood
    """
    t = t_ref[...]                                               # (TR, 1) int32
    col = lax.broadcasted_iota(jnp.int32, x_ref.shape, 1)        # (TR, C)

    # Pass 1: numerically-stable row max (upcast fuses into the reduce).
    m = jnp.max(x_ref[...].astype(jnp.float32), axis=-1, keepdims=True)

    # Pass 2: exp-sum of shifted logits.
    s = jnp.sum(jnp.exp(x_ref[...].astype(jnp.float32) - m),
                axis=-1, keepdims=True)

    # Pass 3: one-hot gather of the target logit (no dynamic gather on TPU).
    # NOTE: out-of-range labels silently give picked=0 (torch would raise).
    picked = jnp.sum(jnp.where(col == t, x_ref[...].astype(jnp.float32), 0.0),
                     axis=-1, keepdims=True)

    nll_ref[...] = m + jnp.log(s) - picked


def mc_cross_entropy_loss(pred, target, num_samples, *,
                          target_block_bytes=None,
                          vmem_limit_bytes=None):
    """JAX/Pallas equivalent of MC_CrossEntropyLoss(num_samples)(pred, target)."""
    assert isinstance(num_samples, int) and num_samples > 0
    assert pred.ndim == 3, f"Prediction should be [MC, BS, C], got {pred.shape}"
    assert target.ndim == 1, f"Target should be [BS], got {target.shape}"
    MC, BS, C = pred.shape
    assert target.shape == (BS,)
    N = MC * BS

    itemsize = jnp.dtype(pred.dtype).itemsize
    sublane = max(8, 32 // itemsize)            # 8 (f32), 16 (bf16), 32 (int8/fp8)

    # --- generation-aware block sizing (v7x has only 64 MiB VMEM per TC) -------
    if target_block_bytes is None or vmem_limit_bytes is None:
        try:
            vmem_cap = int(getattr(pltpu.get_tpu_info(), "vmem_capacity_bytes",
                                   64 * 2**20))
        except Exception:
            vmem_cap = 64 * 2**20               # conservative (v7x-sized) fallback
        big_vmem = vmem_cap >= 100 * 2**20      # v5e / v6e: 128 MiB per TC
        if target_block_bytes is None:
            target_block_bytes = (8 if big_vmem else 4) * 2**20
        if vmem_limit_bytes is None:
            vmem_limit_bytes = (64 if big_vmem else 40) * 2**20

    # Row tile: budget is in f32-equivalent bytes so the double-buffered input
    # blocks *plus* spilled f32 intermediates stay well under the VMEM limit
    # for both f32 and bf16 inputs. Rounded to the dtype's sublane multiple.
    rt = max(sublane, target_block_bytes // max(1, C * 4))
    rt = (rt // sublane) * sublane
    n_ceil = -(-N // sublane) * sublane
    rt = min(rt, n_ceil)                        # never exceed (rounded-up) N
    if N > sublane:
        # Keep at least 2 row tiles so the "parallel" grid axis can shard across
        # both TensorCores on v7x (on v5e/v6e this just adds one cheap grid step).
        half = -(-((N + 1) // 2) // sublane) * sublane
        rt = min(rt, half)
    num_tiles = pl.cdiv(N, rt)

    # Row-major flatten of [MC, BS, C] and the MC-times-repeated labels
    # (matches torch .flatten(0,1) / target.repeat(MC)). No padding of the
    # logits: the last partial block over-reads garbage rows whose outputs are
    # masked on write; rows are independent, so this is safe.
    logits = pred.reshape(N, C)
    labels = jnp.tile(target.astype(jnp.int32), MC).reshape(N, 1)

    nll = pl.pallas_call(
        _mc_ce_kernel,
        out_shape=jax.ShapeDtypeStruct((N, 1), jnp.float32),
        grid_spec=pltpu.PrefetchScalarGridSpec(
            num_scalar_prefetch=0,
            grid=(num_tiles,),
            in_specs=[
                pl.BlockSpec((rt, C), lambda i: (i, 0)),
                pl.BlockSpec((rt, 1), lambda i: (i, 0)),
            ],
            out_specs=pl.BlockSpec((rt, 1), lambda i: (i, 0)),
        ),
        compiler_params=pltpu.CompilerParams(
            dimension_semantics=("parallel",),
            vmem_limit_bytes=vmem_limit_bytes),
    )(logits, labels)

    # reduction='mean' over the MC*BS rows, then * num_samples.
    return jnp.mean(nll) * jnp.float32(num_samples)


def _reference_loss(pred, target, num_samples):
    MC, BS, C = pred.shape
    logits = pred.reshape(MC * BS, C).astype(jnp.float32)
    labels = jnp.tile(target.astype(jnp.int32), MC)
    logp = jax.nn.log_softmax(logits, axis=-1)
    nll = -jnp.take_along_axis(logp, labels[:, None], axis=-1)[:, 0]
    return jnp.mean(nll) * num_samples


def _check(pred, target, num_samples, **kw):
    loss = jax.block_until_ready(mc_cross_entropy_loss(pred, target, num_samples, **kw))
    ref = jax.block_until_ready(_reference_loss(pred, target, num_samples))
    assert jnp.allclose(loss, ref, rtol=1e-4, atol=1e-5), (loss, ref)


if __name__ == "__main__":
    key = jax.random.PRNGKey(0)

    # 1) Small canonical case: MC=4, BS=2, C=32 (single exact tile).
    MC, BS, C = 4, 2, 32
    k_pred, k_tgt, key = jax.random.split(key, 3)
    pred = jax.random.normal(k_pred, (MC, BS, C), dtype=jnp.float32)
    target = jax.random.randint(k_tgt, (BS,), 0, C, dtype=jnp.int32)
    _check(pred, target, MC)

    # 2) Ragged N with multiple tiles (exercises the unpadded OOB tail path).
    MC2, BS2, C2 = 3, 50, 257
    k_pred, k_tgt, key = jax.random.split(key, 3)
    pred2 = jax.random.normal(k_pred, (MC2, BS2, C2), dtype=jnp.float32)
    target2 = jax.random.randint(k_tgt, (BS2,), 0, C2, dtype=jnp.int32)
    _check(pred2, target2, MC2)

    # 3) bf16 logits: half the HBM traffic; kernel upcasts per-vreg to f32.
    k_pred, k_tgt, key = jax.random.split(key, 3)
    pred3 = jax.random.normal(k_pred, (2, 17, 160), dtype=jnp.bfloat16)
    target3 = jax.random.randint(k_tgt, (17,), 0, 160, dtype=jnp.int32)
    _check(pred3, target3, 2)

    print("KERNEL_OK")
</pallas_src>

<mosaic_0001>
module attributes {stable_mosaic.version = 11 : i64} {
  func.func @_mc_ce_kernel(%arg0: i32, %arg1: memref<8x32xf32, #tpu.memory_space<vmem>>, %arg2: memref<8x1xi32, #tpu.memory_space<vmem>>, %arg3: memref<8x1xf32, #tpu.memory_space<vmem>>) attributes {dimension_semantics = [#tpu.dimension_semantics<parallel>], iteration_bounds = array<i64: 1>, scalar_prefetch = 0 : i64, scratch_operands = 0 : i64, tpu.core_type = #tpu.core_type<tc>, window_params = [{transform_indices = @transform_0, window_bounds = array<i64: 8, 32>}, {transform_indices = @transform_1, window_bounds = array<i64: 8, 1>}, {transform_indices = @transform_2, window_bounds = array<i64: 8, 1>}]} {
    %c0 = arith.constant 0 : index
    %c0_0 = arith.constant 0 : index
    %0 = vector.load %arg2[%c0, %c0_0] : memref<8x1xi32, #tpu.memory_space<vmem>>, vector<8x1xi32>
    %1 = tpu.iota {dimensions = array<i32: 1>} : vector<8x32xi32>
    %c0_1 = arith.constant 0 : index
    %c0_2 = arith.constant 0 : index
    %2 = vector.load %arg1[%c0_1, %c0_2] : memref<8x32xf32, #tpu.memory_space<vmem>>, vector<8x32xf32>
    %cst = arith.constant dense<0xFF800000> : vector<8xf32>
    %3 = vector.multi_reduction <maximumf>, %2, %cst [1] : vector<8x32xf32> to vector<8xf32>
    %4 = vector.shape_cast %3 : vector<8xf32> to vector<8x1xf32>
    %c0_3 = arith.constant 0 : index
    %c0_4 = arith.constant 0 : index
    %5 = vector.load %arg1[%c0_3, %c0_4] : memref<8x32xf32, #tpu.memory_space<vmem>>, vector<8x32xf32>
    %6 = vector.broadcast %4 : vector<8x1xf32> to vector<8x32xf32>
    %7 = arith.subf %5, %6 : vector<8x32xf32>
    %8 = math.exp %7 : vector<8x32xf32>
    %cst_5 = arith.constant dense<0.000000e+00> : vector<8xf32>
    %9 = vector.multi_reduction <add>, %8, %cst_5 [1] : vector<8x32xf32> to vector<8xf32>
    %10 = vector.shape_cast %9 : vector<8xf32> to vector<8x1xf32>
    %11 = vector.broadcast %0 : vector<8x1xi32> to vector<8x32xi32>
    %12 = arith.cmpi eq, %1, %11 : vector<8x32xi32>
    %c0_6 = arith.constant 0 : index
    %c0_7 = arith.constant 0 : index
    %13 = vector.load %arg1[%c0_6, %c0_7] : memref<8x32xf32, #tpu.memory_space<vmem>>, vector<8x32xf32>
    %cst_8 = arith.constant 0.000000e+00 : f32
    %14 = vector.broadcast %cst_8 : f32 to vector<8x32xf32>
    %15 = arith.select %12, %13, %14 : vector<8x32xi1>, vector<8x32xf32>
    %cst_9 = arith.constant dense<0.000000e+00> : vector<8xf32>
    %16 = vector.multi_reduction <add>, %15, %cst_9 [1] : vector<8x32xf32> to vector<8xf32>
    %17 = vector.shape_cast %16 : vector<8xf32> to vector<8x1xf32>
    %18 = math.log %10 : vector<8x1xf32>
    %19 = arith.addf %4, %18 : vector<8x1xf32>
    %20 = arith.subf %19, %17 : vector<8x1xf32>
    %c0_10 = arith.constant 0 : index
    %c0_11 = arith.constant 0 : index
    %21 = vector.load %arg3[%c0_10, %c0_11] : memref<8x1xf32, #tpu.memory_space<vmem>>, vector<8x1xf32>
    tpu.vector_store %arg3[%c0_10, %c0_11], %20 {strides = array<i32>} : memref<8x1xf32, #tpu.memory_space<vmem>>, vector<8x1xf32>,
    return
  }
  func.func @transform_0(%arg0: i32) -> (i32, i32) {
    %c0_i32 = arith.constant 0 : i32
    %c0_i32_0 = arith.constant 0 : i32
    return %arg0, %c0_i32 : i32, i32
  }
  func.func @transform_1(%arg0: i32) -> (i32, i32) {
    %c0_i32 = arith.constant 0 : i32
    %c0_i32_0 = arith.constant 0 : i32
    return %arg0, %c0_i32 : i32, i32
  }
  func.func @transform_2(%arg0: i32) -> (i32, i32) {
    %c0_i32 = arith.constant 0 : i32
    %c0_i32_0 = arith.constant 0 : i32
    return %arg0, %c0_i32 : i32, i32
  }
}

</mosaic_0001>

<bundles_post_ra>
// kernel: tpu_custom_call.1
= control target key start
LH: loop header
LB: loop body
LE: loop exit
PB: predicated region body
PF: predicated region fallthrough
CT: control target
= control target key end

     0   :  { %vm15_vm0 = vcmask 261120   ;;  %v49_v1 = vmov 0   ;;  %v12_v9 = vlaneseq  ;;  %vm37_vm2 = vcmask 7168   ;;  %s77_s0 = inlined_call_operand.vmem [shape: f32[8,32], index: 0, kind: input, shape index: {}]   ;;  %s78_s1 = inlined_call_operand.vmem [shape: s32[8,1], index: 1, kind: input, shape index: {}]   ;;  %s79_s2 = inlined_call_operand.vmem [shape: f32[8,1], index: 2, kind: output, shape index: {}]  }
   0x1   :  { %v14_v0 = vld [vmem:[%s77_s0] sm:$0xff]  ;;  %44 = vset.pattern.permute.xlu0 %v49_v1 }
   0x2   :  { %v16_v2 = vsel %vm15_vm0, %v14_v0, -inf  ;;  %v11_v3 = vld [vmem:[%s78_s1] sm:$0xff]  ;;  %v13_v10 = vand.u32 127, %v12_v9 }
   0x3   :  { %17 = vmax.xlane.f32.xlu0 %v16_v2 }
  0x17   :  { %26 = vperm.xlu0 %44, %v11_v3  }
  0x76   :  { %v18_v4 = vpop.xlane.xlu0 %17 }
  0x77   :  { %v19_v5 = vsub.f32 %v14_v0, %v18_v4 }
  0x79   :  { %v20_v6 = vmul.f32 1.442695, %v19_v5 }
  0x7b   :  { %45 = vpow2.f32 %v20_v6 }
  0x81   :  { %v46_v7 = vpop.eup %45 }
  0x82   :  { %v22_v8 = vsel %vm15_vm0, %v46_v7, 0.0 }
  0x83   :  { %23 = vadd.xlane.f32.xlu1 %v22_v8 }
  0x89   :  { %v27_v11 = vpop.permute.xlu0 %26 }
  0x8a   :  { %vm28_vm1 = vcmp.eq.s32.totalorder %v13_v10, %v27_v11 }
  0x8b   :  { %v29_v12 = vsel %vm28_vm1, %v14_v0, 0.0 }
  0x8c   :  { %v30_v13 = vsel %vm15_vm0, %v29_v12, 0.0 }
  0x8d   :  { %31 = vadd.xlane.f32.xlu1 %v30_v13 }
  0xf6   :  { %v24_v14 = vpop.xlane.xlu1 %23 }
  0xf7   :  { %47 = vlog2.f32 %v24_v14 }
  0xfd   :  { %v48_v15 = vpop.eup %47 }
  0xfe   :  { %v34_v16 = vmul.f32 0.6931472, %v48_v15 }
 0x100   :  { %v35_v17 = vadd.f32 %v34_v16, %v18_v4  ;;  %v32_v18 = vpop.xlane.xlu1 %31 }
 0x102   :  { %v36_v19 = vsub.f32 %v35_v17, %v32_v18 }
 0x104   :  { %38 = vst.msk [vmem:[%s79_s2] sm:$0xff] %vm37_vm2, %v36_v19 }

</bundles_post_ra>
